<compile_context>
chip_gen: v6e
topology: v6e:2x2x1
jax: 0.10.0
libtpu: 0.0.40
codegen_flags: <defaults>
</compile_context>

<pallas_src>
import jax
import jax.numpy as jnp
from jax.experimental import pallas as pl
from jax.experimental.pallas import tpu as pltpu


def _round_up(x, m):
    return ((x + m - 1) // m) * m


# ---------------------------------------------------------------------------
# Kernel
# ---------------------------------------------------------------------------
def _make_mlp_ann_st_kernel(num_hidden, transpose_in_kernel):
    """Kernel body.

    refs = (x_nl, x_l, c_scalars[SMEM], (W_i, b_i) * num_hidden,
            w_last_col, wc_col, out)
    c_scalars = [[wc0, bc, b_last]]  (concat weight on s, concat bias,
                                      last-layer bias)
    """

    def kernel(*refs):
        xnl_ref, xl_ref, c_ref = refs[0], refs[1], refs[2]
        w_last_ref, wc_ref, out_ref = refs[-3], refs[-2], refs[-1]

        # Load and (optionally) transpose to feature-major [F, TM].  Cast to
        # f32 before the transpose (best-supported layout path; inputs may be
        # stored bf16 purely to halve the HBM stream).
        x_nl = xnl_ref[...].astype(jnp.float32)
        x_l = xl_ref[...].astype(jnp.float32)
        if transpose_in_kernel:
            x_nl = jnp.transpose(x_nl)        # [TM, nl] -> [nl, TM]  (XLU)
            x_l = jnp.transpose(x_l)          # [TM, l]  -> [l, TM]

        def sigmoid(z):                        # 1 EUP tanh + 2 VPU ops
            return 0.5 * jnp.tanh(0.5 * z) + 0.5

        h = x_nl                               # [nl, TM]
        for li in range(num_hidden):
            W = refs[3 + 2 * li][...]          # [out_i, in_i]  (torch layout)
            b = refs[4 + 2 * li][...]          # [out_i, 1]
            h = sigmoid(jnp.dot(W, h, preferred_element_type=jnp.float32) + b)

        # Final Linear(hidden[-1], 1) + Sigmoid: 1-row result -> VPU multiply
        # + sublane reduce instead of a 1-sublane MXU result.
        z = jnp.sum(h * w_last_ref[...], axis=0, keepdims=True) + c_ref[0, 2]
        s = sigmoid(z)                         # [1, TM]

        # Concat layer: cat([s, x_l], 1) @ Wc.T + bc
        #            == wc0 * s + sum_j wc_l[j] * x_l[j, :] + bc   (exact)
        lin = jnp.sum(x_l * wc_ref[...], axis=0, keepdims=True)   # [1, TM]
        out_ref[...] = (c_ref[0, 0] * s + lin + c_ref[0, 1]).astype(out_ref.dtype)

    return kernel


# ---------------------------------------------------------------------------
# Wrapper
# ---------------------------------------------------------------------------
_IN_KERNEL_TRANSPOSE_OK = None   # cached capability probe (True / False)


def _default_input_dtype():
    # bf16 input storage on v6e / v7x (bf16 VPU/EUP + half the HBM stream),
    # float32 on v5e and anything unrecognized.
    try:
        kind = jax.devices()[0].device_kind.lower()
    except Exception:
        return jnp.float32
    if ("v6" in kind) or ("v7" in kind) or ("7x" in kind):
        return jnp.bfloat16
    return jnp.float32


def _choose_tile(batch, tile_batch):
    b128 = _round_up(max(batch, 1), 128)
    tm = max(128, min(_round_up(tile_batch, 128), b128))
    if b128 >= 256:
        # Ensure >= 2 grid steps so both of v7x's TensorCores get work.
        tm = min(tm, _round_up(-(-b128 // 2), 128))
    return tm, pl.cdiv(batch, tm)


def mlp_ann_st_forward(x_nl, x_l, Ws, bs, Wc, bc, *, tile_batch=8192,
                       input_dtype=None, transpose_in_kernel=None):
    """Pallas forward pass for MLP_ANN_ST.

    Parameter layout follows torch.nn.Linear:
      x_nl: [B, input_size_nl]    x_l: [B, input_size_l]
      Ws[i]: [out_i, in_i]        bs[i]: [out_i]     (last layer: out = 1)
      Wc:   [1, input_size_l+1]   bc:   [1]
    Returns: [B, 1] float32.

    `input_dtype` controls only the HBM/VMEM storage of x_nl/x_l; weights,
    matmul accumulation and all activation math stay float32.
    """
    global _IN_KERNEL_TRANSPOSE_OK

    B, nl = x_nl.shape
    l = x_l.shape[1]
    num_layers = len(Ws)
    assert len(bs) == num_layers and num_layers >= 1
    num_hidden = num_layers - 1
    hidden_last = Ws[-1].shape[1]

    if input_dtype is None:
        input_dtype = _default_input_dtype()

    TM, num_tiles = _choose_tile(B, tile_batch)

    # ---- tiny parameter preprocessing (KB-sized, all float32) --------------
    Ws_k = [jnp.asarray(W, jnp.float32) for W in Ws[:-1]]
    bs_k = [jnp.asarray(b, jnp.float32).reshape(-1, 1) for b in bs[:-1]]
    w_last_col = jnp.asarray(Ws[-1], jnp.float32).reshape(hidden_last, 1)
    wc_flat = jnp.asarray(Wc, jnp.float32).reshape(-1)
    wc_col = wc_flat[1:].reshape(l, 1)
    c_scalars = jnp.stack(
        [wc_flat[0],
         jnp.asarray(bc, jnp.float32).reshape(-1)[0],
         jnp.asarray(bs[-1], jnp.float32).reshape(-1)[0]]).reshape(1, 3)

    param_args, param_specs = [], []
    for W, b in zip(Ws_k, bs_k):
        # Constant index_maps -> parameters stay VMEM-resident across the grid.
        param_specs.append(pl.BlockSpec(W.shape, lambda i: (0, 0)))
        param_specs.append(pl.BlockSpec(b.shape, lambda i: (0, 0)))
        param_args += [W, b]
    param_specs.append(pl.BlockSpec(w_last_col.shape, lambda i: (0, 0)))
    param_specs.append(pl.BlockSpec(wc_col.shape, lambda i: (0, 0)))
    param_args += [w_last_col, wc_col]

    def run(xpose_in_kernel):
        if xpose_in_kernel:
            # Inputs exactly as given (batch-major): zero extra HBM passes.
            a_nl = x_nl.astype(input_dtype)                     # [B, nl]
            a_l = x_l.astype(input_dtype)                       # [B, l]
            x_specs = [pl.BlockSpec((TM, nl), lambda i: (i, 0)),
                       pl.BlockSpec((TM, l), lambda i: (i, 0))]
        else:
            # Fallback: proven host-transposed feature-major layout.
            a_nl = x_nl.T.astype(input_dtype)                   # [nl, B]
            a_l = x_l.T.astype(input_dtype)                     # [l, B]
            x_specs = [pl.BlockSpec((nl, TM), lambda i: (0, i)),
                       pl.BlockSpec((l, TM), lambda i: (0, i))]

        kernel = _make_mlp_ann_st_kernel(num_hidden, xpose_in_kernel)
        return pl.pallas_call(
            kernel,
            out_shape=jax.ShapeDtypeStruct((1, B), jnp.float32),  # lane-dense
            grid=(num_tiles,),
            in_specs=(x_specs
                      + [pl.BlockSpec(memory_space=pltpu.MemorySpace.SMEM)]
                      + param_specs),
            out_specs=pl.BlockSpec((1, TM), lambda i: (0, i)),
            compiler_params=pltpu.CompilerParams(
                dimension_semantics=("parallel",)),
        )(a_nl, a_l, c_scalars, *param_args)

    if transpose_in_kernel is None:
        if _IN_KERNEL_TRANSPOSE_OK is None:
            try:
                out = jax.block_until_ready(run(True))
                _IN_KERNEL_TRANSPOSE_OK = True
            except Exception:
                _IN_KERNEL_TRANSPOSE_OK = False
                out = run(False)
        else:
            out = run(_IN_KERNEL_TRANSPOSE_OK)
    else:
        out = run(transpose_in_kernel)

    # TODO(synk): if this model is evaluated per timestep, stack all timesteps
    # into the batch axis and issue ONE pallas_call — per-call launch + weight
    # DMA dominate at tiny per-step shapes.
    return jnp.reshape(out, (B, 1))


# ---------------------------------------------------------------------------
# Pure-JAX reference + deterministic init (torch nn.Linear conventions).
# ---------------------------------------------------------------------------
def init_params(key, input_size_nl, hidden_sizes, input_size_l):
    dims = [input_size_nl] + list(hidden_sizes) + [1]
    Ws, bs = [], []
    for i in range(len(dims) - 1):
        fan_in, fan_out = dims[i], dims[i + 1]
        key, kw, kb = jax.random.split(key, 3)
        bound = float(fan_in) ** -0.5
        Ws.append(jax.random.uniform(kw, (fan_out, fan_in), jnp.float32, -bound, bound))
        bs.append(jax.random.uniform(kb, (fan_out,), jnp.float32, -bound, bound))
    fan_in_c = input_size_l + 1
    key, kw, kb = jax.random.split(key, 3)
    bound = float(fan_in_c) ** -0.5
    Wc = jax.random.uniform(kw, (1, fan_in_c), jnp.float32, -bound, bound)
    bc = jax.random.uniform(kb, (1,), jnp.float32, -bound, bound)
    return Ws, bs, Wc, bc


def reference_forward(x_nl, x_l, Ws, bs, Wc, bc):
    h = x_nl
    for W, b in zip(Ws, bs):
        h = jax.nn.sigmoid(h @ W.T + b)
    cat = jnp.concatenate([h, x_l], axis=1)
    return cat @ Wc.T + bc


if __name__ == "__main__":
    input_size_nl, hidden_sizes, input_size_l = 16, [32, 16], 4

    key = jax.random.PRNGKey(0)
    key, kp = jax.random.split(key)
    Ws, bs, Wc, bc = init_params(kp, input_size_nl, hidden_sizes, input_size_l)

    # f32 path: tiny batch (single, padded tile), ragged multi-tile grid, and
    # a batch big enough that the >=2-tile (dual TensorCore) rule kicks in.
    cases = [(8, dict()), (300, dict(tile_batch=128)), (1024, dict())]
    for batch, kw in cases:
        key, kx1, kx2 = jax.random.split(key, 3)
        x_nl = jax.random.normal(kx1, (batch, input_size_nl), jnp.float32)
        x_l = jax.random.normal(kx2, (batch, input_size_l), jnp.float32)

        out = mlp_ann_st_forward(x_nl, x_l, Ws, bs, Wc, bc,
                                 input_dtype=jnp.float32, **kw)
        out = jax.block_until_ready(out)

        ref = reference_forward(x_nl, x_l, Ws, bs, Wc, bc)
        assert out.shape == (batch, 1)
        err = float(jnp.max(jnp.abs(out - ref)))
        assert jnp.allclose(out, ref, atol=1e-4, rtol=1e-4), (
            f"f32 mismatch at batch={batch}: max abs err {err}")

    # bf16 input-storage path (the v6e/v7x deployment default); accumulation
    # stays f32, so only input rounding error is expected.
    batch = 1024
    key, kx1, kx2 = jax.random.split(key, 3)
    x_nl = jax.random.normal(kx1, (batch, input_size_nl), jnp.float32)
    x_l = jax.random.normal(kx2, (batch, input_size_l), jnp.float32)
    out = jax.block_until_ready(
        mlp_ann_st_forward(x_nl, x_l, Ws, bs, Wc, bc, input_dtype=jnp.bfloat16))
    ref = reference_forward(x_nl, x_l, Ws, bs, Wc, bc)
    err = float(jnp.max(jnp.abs(out - ref)))
    assert jnp.allclose(out, ref, atol=5e-2, rtol=5e-2), (
        f"bf16 mismatch: max abs err {err}")

    print("KERNEL_OK")
</pallas_src>

<mosaic_0001>
module attributes {stable_mosaic.version = 11 : i64} {
  func.func @kernel(%arg0: i32, %arg1: memref<128x16xf32, #tpu.memory_space<vmem>>, %arg2: memref<128x4xf32, #tpu.memory_space<vmem>>, %arg3: memref<1x3xf32, #tpu.memory_space<smem>>, %arg4: memref<32x16xf32, #tpu.memory_space<vmem>>, %arg5: memref<32x1xf32, #tpu.memory_space<vmem>>, %arg6: memref<16x32xf32, #tpu.memory_space<vmem>>, %arg7: memref<16x1xf32, #tpu.memory_space<vmem>>, %arg8: memref<16x1xf32, #tpu.memory_space<vmem>>, %arg9: memref<4x1xf32, #tpu.memory_space<vmem>>, %arg10: memref<1x128xf32, #tpu.memory_space<vmem>>) attributes {dimension_semantics = [#tpu.dimension_semantics<parallel>], iteration_bounds = array<i64: 1>, scalar_prefetch = 0 : i64, scratch_operands = 0 : i64, tpu.core_type = #tpu.core_type<tc>, window_params = [{transform_indices = @transform_0, window_bounds = array<i64: 128, 16>}, {transform_indices = @transform_1, window_bounds = array<i64: 128, 4>}, {transform_indices = @transform_2, window_bounds = array<i64: 1, 3>}, {pipeline_mode = #tpu.pipeline_mode<synchronous>, transform_indices = @transform_3, window_bounds = array<i64: 32, 16>}, {pipeline_mode = #tpu.pipeline_mode<synchronous>, transform_indices = @transform_4, window_bounds = array<i64: 32, 1>}, {pipeline_mode = #tpu.pipeline_mode<synchronous>, transform_indices = @transform_5, window_bounds = array<i64: 16, 32>}, {pipeline_mode = #tpu.pipeline_mode<synchronous>, transform_indices = @transform_6, window_bounds = array<i64: 16, 1>}, {pipeline_mode = #tpu.pipeline_mode<synchronous>, transform_indices = @transform_7, window_bounds = array<i64: 16, 1>}, {pipeline_mode = #tpu.pipeline_mode<synchronous>, transform_indices = @transform_8, window_bounds = array<i64: 4, 1>}, {transform_indices = @transform_9, window_bounds = array<i64: 1, 128>}]} {
    %c0 = arith.constant 0 : index
    %c0_0 = arith.constant 0 : index
    %0 = vector.load %arg1[%c0, %c0_0] : memref<128x16xf32, #tpu.memory_space<vmem>>, vector<128x16xf32>
    %c0_1 = arith.constant 0 : index
    %c0_2 = arith.constant 0 : index
    %1 = vector.load %arg2[%c0_1, %c0_2] : memref<128x4xf32, #tpu.memory_space<vmem>>, vector<128x4xf32>
    %2 = tpu.transpose %0, [1, 0] : vector<128x16xf32> -> vector<16x128xf32>
    %3 = tpu.transpose %1, [1, 0] : vector<128x4xf32> -> vector<4x128xf32>
    %c0_3 = arith.constant 0 : index
    %c0_4 = arith.constant 0 : index
    %4 = vector.load %arg4[%c0_3, %c0_4] : memref<32x16xf32, #tpu.memory_space<vmem>>, vector<32x16xf32>
    %c0_5 = arith.constant 0 : index
    %c0_6 = arith.constant 0 : index
    %5 = vector.load %arg5[%c0_5, %c0_6] : memref<32x1xf32, #tpu.memory_space<vmem>>, vector<32x1xf32>
    %cst = arith.constant dense<0.000000e+00> : vector<32x128xf32>
    %6 = tpu.matmul %4, %2, %cst {dimension_numbers = #tpu.dot_dimension_numbers<[1], [0], [0], [1], [0, 0, 1, 1], [], []>} : vector<32x16xf32>, vector<16x128xf32>, vector<32x128xf32> -> vector<32x128xf32>
    %7 = vector.broadcast %5 : vector<32x1xf32> to vector<32x128xf32>
    %8 = arith.addf %6, %7 : vector<32x128xf32>
    %cst_7 = arith.constant 5.000000e-01 : f32
    %9 = vector.broadcast %cst_7 : f32 to vector<32x128xf32>
    %10 = arith.mulf %9, %8 : vector<32x128xf32>
    %11 = math.tanh %10 : vector<32x128xf32>
    %cst_8 = arith.constant 5.000000e-01 : f32
    %12 = vector.broadcast %cst_8 : f32 to vector<32x128xf32>
    %13 = arith.mulf %12, %11 : vector<32x128xf32>
    %cst_9 = arith.constant 5.000000e-01 : f32
    %14 = vector.broadcast %cst_9 : f32 to vector<32x128xf32>
    %15 = arith.addf %13, %14 : vector<32x128xf32>
    %c0_10 = arith.constant 0 : index
    %c0_11 = arith.constant 0 : index
    %16 = vector.load %arg6[%c0_10, %c0_11] : memref<16x32xf32, #tpu.memory_space<vmem>>, vector<16x32xf32>
    %c0_12 = arith.constant 0 : index
    %c0_13 = arith.constant 0 : index
    %17 = vector.load %arg7[%c0_12, %c0_13] : memref<16x1xf32, #tpu.memory_space<vmem>>, vector<16x1xf32>
    %cst_14 = arith.constant dense<0.000000e+00> : vector<16x128xf32>
    %18 = tpu.matmul %16, %15, %cst_14 {dimension_numbers = #tpu.dot_dimension_numbers<[1], [0], [0], [1], [0, 0, 1, 1], [], []>} : vector<16x32xf32>, vector<32x128xf32>, vector<16x128xf32> -> vector<16x128xf32>
    %19 = vector.broadcast %17 : vector<16x1xf32> to vector<16x128xf32>
    %20 = arith.addf %18, %19 : vector<16x128xf32>
    %cst_15 = arith.constant 5.000000e-01 : f32
    %21 = vector.broadcast %cst_15 : f32 to vector<16x128xf32>
    %22 = arith.mulf %21, %20 : vector<16x128xf32>
    %23 = math.tanh %22 : vector<16x128xf32>
    %cst_16 = arith.constant 5.000000e-01 : f32
    %24 = vector.broadcast %cst_16 : f32 to vector<16x128xf32>
    %25 = arith.mulf %24, %23 : vector<16x128xf32>
    %cst_17 = arith.constant 5.000000e-01 : f32
    %26 = vector.broadcast %cst_17 : f32 to vector<16x128xf32>
    %27 = arith.addf %25, %26 : vector<16x128xf32>
    %c0_18 = arith.constant 0 : index
    %c0_19 = arith.constant 0 : index
    %28 = vector.load %arg8[%c0_18, %c0_19] : memref<16x1xf32, #tpu.memory_space<vmem>>, vector<16x1xf32>
    %29 = vector.broadcast %28 : vector<16x1xf32> to vector<16x128xf32>
    %30 = arith.mulf %27, %29 : vector<16x128xf32>
    %cst_20 = arith.constant dense<0.000000e+00> : vector<128xf32>
    %31 = vector.multi_reduction <add>, %30, %cst_20 [0] : vector<16x128xf32> to vector<128xf32>
    %32 = vector.shape_cast %31 : vector<128xf32> to vector<1x128xf32>
    %c0_21 = arith.constant 0 : index
    %c2 = arith.constant 2 : index
    %33 = memref.load %arg3[%c0_21, %c2] : memref<1x3xf32, #tpu.memory_space<smem>>
    %34 = vector.broadcast %33 : f32 to vector<1x128xf32>
    %35 = arith.addf %32, %34 : vector<1x128xf32>
    %cst_22 = arith.constant 5.000000e-01 : f32
    %36 = vector.broadcast %cst_22 : f32 to vector<1x128xf32>
    %37 = arith.mulf %36, %35 : vector<1x128xf32>
    %38 = math.tanh %37 : vector<1x128xf32>
    %cst_23 = arith.constant 5.000000e-01 : f32
    %39 = vector.broadcast %cst_23 : f32 to vector<1x128xf32>
    %40 = arith.mulf %39, %38 : vector<1x128xf32>
    %cst_24 = arith.constant 5.000000e-01 : f32
    %41 = vector.broadcast %cst_24 : f32 to vector<1x128xf32>
    %42 = arith.addf %40, %41 : vector<1x128xf32>
    %c0_25 = arith.constant 0 : index
    %c0_26 = arith.constant 0 : index
    %43 = vector.load %arg9[%c0_25, %c0_26] : memref<4x1xf32, #tpu.memory_space<vmem>>, vector<4x1xf32>
    %44 = vector.broadcast %43 : vector<4x1xf32> to vector<4x128xf32>
    %45 = arith.mulf %3, %44 : vector<4x128xf32>
    %cst_27 = arith.constant dense<0.000000e+00> : vector<128xf32>
    %46 = vector.multi_reduction <add>, %45, %cst_27 [0] : vector<4x128xf32> to vector<128xf32>
    %47 = vector.shape_cast %46 : vector<128xf32> to vector<1x128xf32>
    %c0_28 = arith.constant 0 : index
    %c0_29 = arith.constant 0 : index
    %48 = memref.load %arg3[%c0_28, %c0_29] : memref<1x3xf32, #tpu.memory_space<smem>>
    %49 = vector.broadcast %48 : f32 to vector<1x128xf32>
    %50 = arith.mulf %49, %42 : vector<1x128xf32>
    %51 = arith.addf %50, %47 : vector<1x128xf32>
    %c0_30 = arith.constant 0 : index
    %c1 = arith.constant 1 : index
    %52 = memref.load %arg3[%c0_30, %c1] : memref<1x3xf32, #tpu.memory_space<smem>>
    %53 = vector.broadcast %52 : f32 to vector<1x128xf32>
    %54 = arith.addf %51, %53 : vector<1x128xf32>
    %c0_31 = arith.constant 0 : index
    %c0_32 = arith.constant 0 : index
    %55 = vector.load %arg10[%c0_31, %c0_32] : memref<1x128xf32, #tpu.memory_space<vmem>>, vector<1x128xf32>
    tpu.vector_store %arg10[%c0_31, %c0_32], %54 {strides = array<i32>} : memref<1x128xf32, #tpu.memory_space<vmem>>, vector<1x128xf32>,
    return
  }
  func.func @transform_0(%arg0: i32) -> (i32, i32) {
    %c0_i32 = arith.constant 0 : i32
    %c0_i32_0 = arith.constant 0 : i32
    return %arg0, %c0_i32 : i32, i32
  }
  func.func @transform_1(%arg0: i32) -> (i32, i32) {
    %c0_i32 = arith.constant 0 : i32
    %c0_i32_0 = arith.constant 0 : i32
    return %arg0, %c0_i32 : i32, i32
  }
  func.func @transform_2(%arg0: i32) -> (i32, i32) {
    %c0_i32 = arith.constant 0 : i32
    %c0_i32_0 = arith.constant 0 : i32
    %c0_i32_1 = arith.constant 0 : i32
    return %c0_i32, %c0_i32_0 : i32, i32
  }
  func.func @transform_3(%arg0: i32) -> (i32, i32) {
    %c0_i32 = arith.constant 0 : i32
    %c0_i32_0 = arith.constant 0 : i32
    %c0_i32_1 = arith.constant 0 : i32
    return %c0_i32, %c0_i32_0 : i32, i32
  }
  func.func @transform_4(%arg0: i32) -> (i32, i32) {
    %c0_i32 = arith.constant 0 : i32
    %c0_i32_0 = arith.constant 0 : i32
    %c0_i32_1 = arith.constant 0 : i32
    return %c0_i32, %c0_i32_0 : i32, i32
  }
  func.func @transform_5(%arg0: i32) -> (i32, i32) {
    %c0_i32 = arith.constant 0 : i32
    %c0_i32_0 = arith.constant 0 : i32
    %c0_i32_1 = arith.constant 0 : i32
    return %c0_i32, %c0_i32_0 : i32, i32
  }
  func.func @transform_6(%arg0: i32) -> (i32, i32) {
    %c0_i32 = arith.constant 0 : i32
    %c0_i32_0 = arith.constant 0 : i32
    %c0_i32_1 = arith.constant 0 : i32
    return %c0_i32, %c0_i32_0 : i32, i32
  }
  func.func @transform_7(%arg0: i32) -> (i32, i32) {
    %c0_i32 = arith.constant 0 : i32
    %c0_i32_0 = arith.constant 0 : i32
    %c0_i32_1 = arith.constant 0 : i32
    return %c0_i32, %c0_i32_0 : i32, i32
  }
  func.func @transform_8(%arg0: i32) -> (i32, i32) {
    %c0_i32 = arith.constant 0 : i32
    %c0_i32_0 = arith.constant 0 : i32
    %c0_i32_1 = arith.constant 0 : i32
    return %c0_i32, %c0_i32_0 : i32, i32
  }
  func.func @transform_9(%arg0: i32) -> (i32, i32) {
    %c0_i32 = arith.constant 0 : i32
    %c0_i32_0 = arith.constant 0 : i32
    return %c0_i32, %arg0 : i32, i32
  }
}

module attributes {stable_mosaic.version = 11 : i64} {
  func.func @kernel(%arg0: i32, %arg1: memref<16x128xf32, #tpu.memory_space<vmem>>, %arg2: memref<4x128xf32, #tpu.memory_space<vmem>>, %arg3: memref<1x3xf32, #tpu.memory_space<smem>>, %arg4: memref<32x16xf32, #tpu.memory_space<vmem>>, %arg5: memref<32x1xf32, #tpu.memory_space<vmem>>, %arg6: memref<16x32xf32, #tpu.memory_space<vmem>>, %arg7: memref<16x1xf32, #tpu.memory_space<vmem>>, %arg8: memref<16x1xf32, #tpu.memory_space<vmem>>, %arg9: memref<4x1xf32, #tpu.memory_space<vmem>>, %arg10: memref<1x128xf32, #tpu.memory_space<vmem>>) attributes {dimension_semantics = [#tpu.dimension_semantics<parallel>], iteration_bounds = array<i64: 1>, scalar_prefetch = 0 : i64, scratch_operands = 0 : i64, tpu.core_type = #tpu.core_type<tc>, window_params = [{transform_indices = @transform_0, window_bounds = array<i64: 16, 128>}, {transform_indices = @transform_1, window_bounds = array<i64: 4, 128>}, {transform_indices = @transform_2, window_bounds = array<i64: 1, 3>}, {pipeline_mode = #tpu.pipeline_mode<synchronous>, transform_indices = @transform_3, window_bounds = array<i64: 32, 16>}, {pipeline_mode = #tpu.pipeline_mode<synchronous>, transform_indices = @transform_4, window_bounds = array<i64: 32, 1>}, {pipeline_mode = #tpu.pipeline_mode<synchronous>, transform_indices = @transform_5, window_bounds = array<i64: 16, 32>}, {pipeline_mode = #tpu.pipeline_mode<synchronous>, transform_indices = @transform_6, window_bounds = array<i64: 16, 1>}, {pipeline_mode = #tpu.pipeline_mode<synchronous>, transform_indices = @transform_7, window_bounds = array<i64: 16, 1>}, {pipeline_mode = #tpu.pipeline_mode<synchronous>, transform_indices = @transform_8, window_bounds = array<i64: 4, 1>}, {transform_indices = @transform_9, window_bounds = array<i64: 1, 128>}]} {
    %c0 = arith.constant 0 : index
    %c0_0 = arith.constant 0 : index
    %0 = vector.load %arg1[%c0, %c0_0] : memref<16x128xf32, #tpu.memory_space<vmem>>, vector<16x128xf32>
    %c0_1 = arith.constant 0 : index
    %c0_2 = arith.constant 0 : index
    %1 = vector.load %arg2[%c0_1, %c0_2] : memref<4x128xf32, #tpu.memory_space<vmem>>, vector<4x128xf32>
    %c0_3 = arith.constant 0 : index
    %c0_4 = arith.constant 0 : index
    %2 = vector.load %arg4[%c0_3, %c0_4] : memref<32x16xf32, #tpu.memory_space<vmem>>, vector<32x16xf32>
    %c0_5 = arith.constant 0 : index
    %c0_6 = arith.constant 0 : index
    %3 = vector.load %arg5[%c0_5, %c0_6] : memref<32x1xf32, #tpu.memory_space<vmem>>, vector<32x1xf32>
    %cst = arith.constant dense<0.000000e+00> : vector<32x128xf32>
    %4 = tpu.matmul %2, %0, %cst {dimension_numbers = #tpu.dot_dimension_numbers<[1], [0], [0], [1], [0, 0, 1, 1], [], []>} : vector<32x16xf32>, vector<16x128xf32>, vector<32x128xf32> -> vector<32x128xf32>
    %5 = vector.broadcast %3 : vector<32x1xf32> to vector<32x128xf32>
    %6 = arith.addf %4, %5 : vector<32x128xf32>
    %cst_7 = arith.constant 5.000000e-01 : f32
    %7 = vector.broadcast %cst_7 : f32 to vector<32x128xf32>
    %8 = arith.mulf %7, %6 : vector<32x128xf32>
    %9 = math.tanh %8 : vector<32x128xf32>
    %cst_8 = arith.constant 5.000000e-01 : f32
    %10 = vector.broadcast %cst_8 : f32 to vector<32x128xf32>
    %11 = arith.mulf %10, %9 : vector<32x128xf32>
    %cst_9 = arith.constant 5.000000e-01 : f32
    %12 = vector.broadcast %cst_9 : f32 to vector<32x128xf32>
    %13 = arith.addf %11, %12 : vector<32x128xf32>
    %c0_10 = arith.constant 0 : index
    %c0_11 = arith.constant 0 : index
    %14 = vector.load %arg6[%c0_10, %c0_11] : memref<16x32xf32, #tpu.memory_space<vmem>>, vector<16x32xf32>
    %c0_12 = arith.constant 0 : index
    %c0_13 = arith.constant 0 : index
    %15 = vector.load %arg7[%c0_12, %c0_13] : memref<16x1xf32, #tpu.memory_space<vmem>>, vector<16x1xf32>
    %cst_14 = arith.constant dense<0.000000e+00> : vector<16x128xf32>
    %16 = tpu.matmul %14, %13, %cst_14 {dimension_numbers = #tpu.dot_dimension_numbers<[1], [0], [0], [1], [0, 0, 1, 1], [], []>} : vector<16x32xf32>, vector<32x128xf32>, vector<16x128xf32> -> vector<16x128xf32>
    %17 = vector.broadcast %15 : vector<16x1xf32> to vector<16x128xf32>
    %18 = arith.addf %16, %17 : vector<16x128xf32>
    %cst_15 = arith.constant 5.000000e-01 : f32
    %19 = vector.broadcast %cst_15 : f32 to vector<16x128xf32>
    %20 = arith.mulf %19, %18 : vector<16x128xf32>
    %21 = math.tanh %20 : vector<16x128xf32>
    %cst_16 = arith.constant 5.000000e-01 : f32
    %22 = vector.broadcast %cst_16 : f32 to vector<16x128xf32>
    %23 = arith.mulf %22, %21 : vector<16x128xf32>
    %cst_17 = arith.constant 5.000000e-01 : f32
    %24 = vector.broadcast %cst_17 : f32 to vector<16x128xf32>
    %25 = arith.addf %23, %24 : vector<16x128xf32>
    %c0_18 = arith.constant 0 : index
    %c0_19 = arith.constant 0 : index
    %26 = vector.load %arg8[%c0_18, %c0_19] : memref<16x1xf32, #tpu.memory_space<vmem>>, vector<16x1xf32>
    %27 = vector.broadcast %26 : vector<16x1xf32> to vector<16x128xf32>
    %28 = arith.mulf %25, %27 : vector<16x128xf32>
    %cst_20 = arith.constant dense<0.000000e+00> : vector<128xf32>
    %29 = vector.multi_reduction <add>, %28, %cst_20 [0] : vector<16x128xf32> to vector<128xf32>
    %30 = vector.shape_cast %29 : vector<128xf32> to vector<1x128xf32>
    %c0_21 = arith.constant 0 : index
    %c2 = arith.constant 2 : index
    %31 = memref.load %arg3[%c0_21, %c2] : memref<1x3xf32, #tpu.memory_space<smem>>
    %32 = vector.broadcast %31 : f32 to vector<1x128xf32>
    %33 = arith.addf %30, %32 : vector<1x128xf32>
    %cst_22 = arith.constant 5.000000e-01 : f32
    %34 = vector.broadcast %cst_22 : f32 to vector<1x128xf32>
    %35 = arith.mulf %34, %33 : vector<1x128xf32>
    %36 = math.tanh %35 : vector<1x128xf32>
    %cst_23 = arith.constant 5.000000e-01 : f32
    %37 = vector.broadcast %cst_23 : f32 to vector<1x128xf32>
    %38 = arith.mulf %37, %36 : vector<1x128xf32>
    %cst_24 = arith.constant 5.000000e-01 : f32
    %39 = vector.broadcast %cst_24 : f32 to vector<1x128xf32>
    %40 = arith.addf %38, %39 : vector<1x128xf32>
    %c0_25 = arith.constant 0 : index
    %c0_26 = arith.constant 0 : index
    %41 = vector.load %arg9[%c0_25, %c0_26] : memref<4x1xf32, #tpu.memory_space<vmem>>, vector<4x1xf32>
    %42 = vector.broadcast %41 : vector<4x1xf32> to vector<4x128xf32>
    %43 = arith.mulf %1, %42 : vector<4x128xf32>
    %cst_27 = arith.constant dense<0.000000e+00> : vector<128xf32>
    %44 = vector.multi_reduction <add>, %43, %cst_27 [0] : vector<4x128xf32> to vector<128xf32>
    %45 = vector.shape_cast %44 : vector<128xf32> to vector<1x128xf32>
    %c0_28 = arith.constant 0 : index
    %c0_29 = arith.constant 0 : index
    %46 = memref.load %arg3[%c0_28, %c0_29] : memref<1x3xf32, #tpu.memory_space<smem>>
    %47 = vector.broadcast %46 : f32 to vector<1x128xf32>
    %48 = arith.mulf %47, %40 : vector<1x128xf32>
    %49 = arith.addf %48, %45 : vector<1x128xf32>
    %c0_30 = arith.constant 0 : index
    %c1 = arith.constant 1 : index
    %50 = memref.load %arg3[%c0_30, %c1] : memref<1x3xf32, #tpu.memory_space<smem>>
    %51 = vector.broadcast %50 : f32 to vector<1x128xf32>
    %52 = arith.addf %49, %51 : vector<1x128xf32>
    %c0_31 = arith.constant 0 : index
    %c0_32 = arith.constant 0 : index
    %53 = vector.load %arg10[%c0_31, %c0_32] : memref<1x128xf32, #tpu.memory_space<vmem>>, vector<1x128xf32>
    tpu.vector_store %arg10[%c0_31, %c0_32], %52 {strides = array<i32>} : memref<1x128xf32, #tpu.memory_space<vmem>>, vector<1x128xf32>,
    return
  }
  func.func @transform_0(%arg0: i32) -> (i32, i32) {
    %c0_i32 = arith.constant 0 : i32
    %c0_i32_0 = arith.constant 0 : i32
    return %c0_i32, %arg0 : i32, i32
  }
  func.func @transform_1(%arg0: i32) -> (i32, i32) {
    %c0_i32 = arith.constant 0 : i32
    %c0_i32_0 = arith.constant 0 : i32
    return %c0_i32, %arg0 : i32, i32
  }
  func.func @transform_2(%arg0: i32) -> (i32, i32) {
    %c0_i32 = arith.constant 0 : i32
    %c0_i32_0 = arith.constant 0 : i32
    %c0_i32_1 = arith.constant 0 : i32
    return %c0_i32, %c0_i32_0 : i32, i32
  }
  func.func @transform_3(%arg0: i32) -> (i32, i32) {
    %c0_i32 = arith.constant 0 : i32
    %c0_i32_0 = arith.constant 0 : i32
    %c0_i32_1 = arith.constant 0 : i32
    return %c0_i32, %c0_i32_0 : i32, i32
  }
  func.func @transform_4(%arg0: i32) -> (i32, i32) {
    %c0_i32 = arith.constant 0 : i32
    %c0_i32_0 = arith.constant 0 : i32
    %c0_i32_1 = arith.constant 0 : i32
    return %c0_i32, %c0_i32_0 : i32, i32
  }
  func.func @transform_5(%arg0: i32) -> (i32, i32) {
    %c0_i32 = arith.constant 0 : i32
    %c0_i32_0 = arith.constant 0 : i32
    %c0_i32_1 = arith.constant 0 : i32
    return %c0_i32, %c0_i32_0 : i32, i32
  }
  func.func @transform_6(%arg0: i32) -> (i32, i32) {
    %c0_i32 = arith.constant 0 : i32
    %c0_i32_0 = arith.constant 0 : i32
    %c0_i32_1 = arith.constant 0 : i32
    return %c0_i32, %c0_i32_0 : i32, i32
  }
  func.func @transform_7(%arg0: i32) -> (i32, i32) {
    %c0_i32 = arith.constant 0 : i32
    %c0_i32_0 = arith.constant 0 : i32
    %c0_i32_1 = arith.constant 0 : i32
    return %c0_i32, %c0_i32_0 : i32, i32
  }
  func.func @transform_8(%arg0: i32) -> (i32, i32) {
    %c0_i32 = arith.constant 0 : i32
    %c0_i32_0 = arith.constant 0 : i32
    %c0_i32_1 = arith.constant 0 : i32
    return %c0_i32, %c0_i32_0 : i32, i32
  }
  func.func @transform_9(%arg0: i32) -> (i32, i32) {
    %c0_i32 = arith.constant 0 : i32
    %c0_i32_0 = arith.constant 0 : i32
    return %c0_i32, %arg0 : i32, i32
  }
}

</mosaic_0001>

<bundles_post_ra>
// kernel: tpu_custom_call.1
= control target key start
LH: loop header
LB: loop body
LE: loop exit
PB: predicated region body
PF: predicated region fallthrough
CT: control target
= control target key end

     0   :  { %14 = vsyncpa [#allocation4], 0  ;;  %s862_s0 = inlined_call_operand.vmem [shape: f32[8,16], index: 0, kind: input, shape index: {}]   ;;  %s863_s1 = inlined_call_operand.vmem [shape: f32[8,4], index: 1, kind: input, shape index: {}]   ;;  %s864_s2 = inlined_call_operand.vmem [shape: f32[1,3], index: 2, kind: input, shape index: {}]   ;;  %s865_s3 = inlined_call_operand.vmem [shape: f32[32,16], index: 3, kind: input, shape index: {}]   ;;  %s866_s4 = inlined_call_operand.vmem [shape: f32[32,1], index: 4, kind: input, shape index: {}]   ;;  %s867_s5 = inlined_call_operand.vmem [shape: f32[16,32], index: 5, kind: input, shape index: {}]   ;;  %s868_s6 = inlined_call_operand.vmem [shape: f32[16,1], index: 6, kind: input, shape index: {}]   ;;  %s869_s7 = inlined_call_operand.vmem [shape: f32[16,1], index: 7, kind: input, shape index: {}]   ;;  %s870_s8 = inlined_call_operand.vmem [shape: f32[4,1], index: 8, kind: input, shape index: {}]   ;;  %s871_s9 = inlined_call_operand.hbm [shape: f32[1,8], index: 9, kind: output, shape index: {}]  }
   0x1   :  { %15 = vsyncpa [#allocation3], 0  ;;  %s26_s11 = sshll.u32 %s864_s2, 4  ;;  %s27_s11 = int_to_ptr.vmem [resolvable:$true] %s26_s11 }
   0x2   :  { %s588_s12 = scalar_lea.vmem %s27_s11, 16  ;;  %p593_p1 = scmp.lt.s32.totalorder %s27_s11, %s27_s11 }
   0x3   :  { %p589_p0 = scmp.ne.s32.totalorder %s27_s11, %s588_s12  ;;  %p594_p2 = scmp.lt.s32.totalorder %s588_s12, %s588_s12 }
   0x5   :  { %p595_p3 = por %p594_p2, %p593_p1 }
   0x7   :  { %p596_p4 = pnand %p595_p3, %p589_p0 }
   0x9   :  { %599 = shalt.err (!%p596_p4)
}
   0xa   :  { %s624_s13 = smov [#allocation2]  }
   0xb   :  { %29 = dma.vmem_to_smem %s27_s11, 16, %s624_s13, [#allocation4]  }
   0xc   :  { %620 = dma.done.wait [#allocation4], 16  }
   0xd   :  { %621 = vsyncadd [#allocation4], 4294967280 }
   0xe   :  { %45 = sfence }
   0xf   :  { %v61_v0 = vld [vmem:[%s862_s0 + $0x78] sm:$0xff]  ;;  %vm138_vm0 = vcmask 130048   ;;  %v60_v1 = vld [vmem:[%s862_s0 + $0x70] sm:$0xff]  ;;  %v625_v2 = vmov 0   ;;  %v59_v3 = vld [vmem:[%s862_s0 + $0x68] sm:$0xff]  ;;  %vm314_vm1 = vcmask 261120  }
  0x10   :  { %520 = vmatprep.subr.msk.mxu0 %vm138_vm0, %v61_v0  ;;  %573 = vset.pattern.permute.xlu1 %v625_v2  ;;  %v110_v4 = vld [vmem:[%s865_s3] sm:$0xff]  ;;  %v115_v5 = vld [vmem:[%s866_s4 + $0x8] sm:$0xff]  ;;  %v117_v8 = vld [vmem:[%s866_s4 + $0x18] sm:$0xff]  ;;  %vm439_vm2 = vcmask 1043456   ;;  %s493_s26 = sld [smem:[#allocation2 + $0x1]]  ;;  %s626_s27 = smov [#allocation5]  }
  0x11   :  { %521 = vmatpush3.xpose.msk.msra.mxu0 %vm138_vm0, %v61_v0  ;;  %572 = vset.pattern.permute.xlu0 %v625_v2  ;;  %v58_v6 = vld [vmem:[%s862_s0 + $0x60] sm:$0xff]  ;;  %v116_v9 = vld [vmem:[%s866_s4 + $0x10] sm:$0xff]  ;;  %v57_v10 = vld [vmem:[%s862_s0 + $0x58] sm:$0xff]  ;;  %s461_s28 = sshll.u32 %s626_s27, 4  ;;  %s462_s28 = int_to_ptr.vmem [resolvable:$true] %s461_s28 }
  0x12   :  { %522 = vmatprep.subr.msk.mxu0 %vm138_vm0, %v60_v1  ;;  %552 = vmatprep.mubr.msk.f32.mxu0 %vm138_vm0, %v110_v4  ;;  %v114_v7 = vld [vmem:[%s866_s4] sm:$0xff]  ;;  %v303_v11 = vld [vmem:[%s868_s6 + $0x8] sm:$0xff]  ;;  %v56_v13 = vld [vmem:[%s862_s0 + $0x50] sm:$0xff]  ;;  %s600_s29 = scalar_lea.vmem %s462_s28, 16  ;;  %s604_s30 = scalar_lea.vmem %s462_s28, 32 }
  0x13   :  { %125 = vperm.xlu1 %573, %v115_v5   ;;  %135 = vperm.xlu0 %572, %v117_v8   ;;  %v302_v12 = vld [vmem:[%s868_s6] sm:$0xff]  ;;  %v405_v14 = vld [vmem:[%s869_s7 + $0x8] sm:$0xff]  ;;  %v53_v19 = vld [vmem:[%s862_s0 + $0x38] sm:$0xff]  ;;  %p601_p5 = scmp.ne.s32.totalorder %s462_s28, %s600_s29  ;;  %p605_p6 = scmp.lt.s32.totalorder %s462_s28, %s462_s28 }
  0x14   :  { %v404_v15 = vld [vmem:[%s869_s7] sm:$0xff]  ;;  %v55_v16 = vld [vmem:[%s862_s0 + $0x48] sm:$0xff]  ;;  %v52_v20 = vld [vmem:[%s862_s0 + $0x30] sm:$0xff]  ;;  %p606_p7 = scmp.lt.s32.totalorder %s604_s30, %s600_s29 }
  0x15   :  { %523 = vmatpush3.xpose.msk.msra.mxu0 %vm138_vm0, %v60_v1  ;;  %v432_v17 = vld [vmem:[%s870_s8] sm:$0xf]  ;;  %v51_v21 = vld [vmem:[%s862_s0 + $0x28] sm:$0xff]  ;;  %v49_v23 = vld [vmem:[%s862_s0 + $0x18] sm:$0xff]  ;;  %s447_s8 = sld [smem:[#allocation2]] }
  0x16   :  { %524 = vmatprep.subr.msk.mxu0 %vm138_vm0, %v59_v3  ;;  %v54_v18 = vld [vmem:[%s862_s0 + $0x40] sm:$0xff]  ;;  %v48_v24 = vld [vmem:[%s862_s0 + $0x10] sm:$0xff]  ;;  %v47_v25 = vld [vmem:[%s862_s0 + $0x8] sm:$0xff]  ;;  %p607_p8 = por %p606_p7, %p605_p6 }
  0x17   :  { %120 = vperm.xlu1 %573, %v114_v7   ;;  %130 = vperm.xlu0 %572, %v116_v9   ;;  %v50_v22 = vld [vmem:[%s862_s0 + $0x20] sm:$0xff]  ;;  %v63_v28 = vld [vmem:[%s863_s1 + $0x8] sm:$0xff]  ;;  %v112_v30 = vld [vmem:[%s865_s3 + $0x10] sm:$0xff] }
  0x18   :  { %v46_v26 = vld [vmem:[%s862_s0] sm:$0xff]  ;;  %v111_v29 = vld [vmem:[%s865_s3 + $0x8] sm:$0xff]  ;;  %v64_v31 = vld [vmem:[%s863_s1 + $0x10] sm:$0xff]  ;;  %p608_p9 = pnand %p607_p8, %p601_p5 }
  0x19   :  { %525 = vmatpush3.xpose.msk.msra.mxu0 %vm138_vm0, %v59_v3  ;;  %v62_v27 = vld [vmem:[%s863_s1] sm:$0xff]  ;;  %v113_v32 = vld [vmem:[%s865_s3 + $0x18] sm:$0xff]  ;;  %v67_v35 = vld [vmem:[%s863_s1 + $0x28] sm:$0xff] }
  0x1a   :  { %526 = vmatprep.subr.msk.mxu0 %vm138_vm0, %v58_v6  ;;  %v65_v33 = vld [vmem:[%s863_s1 + $0x18] sm:$0xff]  ;;  %v66_v34 = vld [vmem:[%s863_s1 + $0x20] sm:$0xff]  ;;  %v68_v36 = vld [vmem:[%s863_s1 + $0x30] sm:$0xff] }
  0x1b   :  { %311 = vperm.xlu1 %573, %v303_v11   ;;  %306 = vperm.xlu0 %572, %v302_v12   ;;  %v69_v37 = vld [vmem:[%s863_s1 + $0x38] sm:$0xff]  ;;  %v70_v38 = vld [vmem:[%s863_s1 + $0x40] sm:$0xff]  ;;  %v71_v39 = vld [vmem:[%s863_s1 + $0x48] sm:$0xff] }
  0x1c   :  { %v72_v40 = vld [vmem:[%s863_s1 + $0x50] sm:$0xff]  ;;  %v73_v41 = vld [vmem:[%s863_s1 + $0x58] sm:$0xff]  ;;  %v74_v42 = vld [vmem:[%s863_s1 + $0x60] sm:$0xff] }
  0x1d   :  { %527 = vmatpush3.xpose.msk.msra.mxu0 %vm138_vm0, %v58_v6  ;;  %v75_v43 = vld [vmem:[%s863_s1 + $0x68] sm:$0xff]  ;;  %v76_v44 = vld [vmem:[%s863_s1 + $0x70] sm:$0xff]  ;;  %v77_v45 = vld [vmem:[%s863_s1 + $0x78] sm:$0xff] }
  0x1e   :  { %528 = vmatprep.subr.msk.mxu0 %vm138_vm0, %v57_v10  ;;  %v300_v46 = vld [vmem:[%s867_s5] sm:$0xff]  ;;  %v301_v11 = vld [vmem:[%s867_s5 + $0x8] sm:$0xff]  ;;  %s492_s5 = sld [smem:[#allocation2 + $0x2]] }
  0x1f   :  { %413 = vperm.xlu1 %573, %v405_v14   ;;  %408 = vperm.xlu0 %572, %v404_v15  }
  0x20   :  { %566 = vmatprep.mubr.msk.f32.mxu1 %vm314_vm1, %v300_v46 }
  0x21   :  { %529 = vmatpush3.xpose.msk.msra.mxu0 %vm138_vm0, %v57_v10 }
  0x22   :  { %530 = vmatprep.subr.msk.mxu0 %vm138_vm0, %v56_v13 }
  0x23   :  { %435 = vperm.xlu0 %572, %v432_v17  }
  0x25   :  { %531 = vmatpush3.xpose.msk.msra.mxu0 %vm138_vm0, %v56_v13 }
  0x26   :  { %532 = vmatprep.subr.msk.mxu0 %vm138_vm0, %v55_v16 }
  0x29   :  { %533 = vmatpush3.xpose.msk.msra.mxu0 %vm138_vm0, %v55_v16 }
  0x2a   :  { %534 = vmatprep.subr.msk.mxu0 %vm138_vm0, %v54_v18 }
  0x2d   :  { %535 = vmatpush3.xpose.msk.msra.mxu0 %vm138_vm0, %v54_v18 }
  0x2e   :  { %536 = vmatprep.subr.msk.mxu0 %vm138_vm0, %v53_v19 }
  0x31   :  { %537 = vmatpush3.xpose.msk.msra.mxu0 %vm138_vm0, %v53_v19 }
  0x32   :  { %538 = vmatprep.subr.msk.mxu0 %vm138_vm0, %v52_v20 }
  0x35   :  { %539 = vmatpush3.xpose.msk.msra.mxu0 %vm138_vm0, %v52_v20 }
  0x36   :  { %540 = vmatprep.subr.msk.mxu0 %vm138_vm0, %v51_v21 }
  0x39   :  { %541 = vmatpush3.xpose.msk.msra.mxu0 %vm138_vm0, %v51_v21 }
  0x3a   :  { %542 = vmatprep.subr.msk.mxu0 %vm138_vm0, %v50_v22 }
  0x3d   :  { %543 = vmatpush3.xpose.msk.msra.mxu0 %vm138_vm0, %v50_v22 }
  0x3e   :  { %544 = vmatprep.subr.msk.mxu0 %vm138_vm0, %v49_v23 }
  0x41   :  { %545 = vmatpush3.xpose.msk.msra.mxu0 %vm138_vm0, %v49_v23 }
  0x42   :  { %546 = vmatprep.subr.msk.mxu0 %vm138_vm0, %v48_v24 }
  0x45   :  { %547 = vmatpush3.xpose.msk.msra.mxu0 %vm138_vm0, %v48_v24 }
  0x46   :  { %548 = vmatprep.subr.msk.mxu0 %vm138_vm0, %v47_v25 }
  0x48   :  { %78 = vxpose.xlu1.b32.start [1/16] (narrow) %v62_v27, 8 }
  0x49   :  { %549 = vmatpush3.xpose.msk.msra.mxu0 %vm138_vm0, %v47_v25 }
  0x4a   :  { %550 = vmatprep.subr.msk.mxu0 %vm138_vm0, %v46_v26 }
  0x4c   :  { %79 = vxpose.xlu1.b32.cont [2/16] (narrow) %v63_v28, 8 }
  0x4d   :  { %551 = vmatpush3.xpose.msk.msra.mxu0 %vm138_vm0, %v46_v26 }
  0x50   :  { %553 = vmatmul.mubr.msk.f32.vlgmr.msra.gmra.mxu0 %vm138_vm0, %v111_v29  ;;  %80 = vxpose.xlu1.b32.cont [3/16] (narrow) %v64_v31, 8 }
  0x51   :  { %555 = vmatprep.mubr.msk.f32.mxu0 %vm138_vm0, %v112_v30 }
  0x54   :  { %556 = vmatmul.mubr.msk.f32.gmra.mxu0 %vm138_vm0, %v113_v32  ;;  %81 = vxpose.xlu1.b32.cont [4/16] (narrow) %v65_v33, 8 }
  0x58   :  { %82 = vxpose.xlu1.b32.cont [5/16] (narrow) %v66_v34, 8 }
  0x5c   :  { %83 = vxpose.xlu1.b32.cont [6/16] (narrow) %v67_v35, 8 }
  0x60   :  { %84 = vxpose.xlu1.b32.cont [7/16] (narrow) %v68_v36, 8 }
  0x64   :  { %85 = vxpose.xlu1.b32.cont [8/16] (narrow) %v69_v37, 8 }
  0x68   :  { %86 = vxpose.xlu1.b32.cont [9/16] (narrow) %v70_v38, 8 }
  0x6c   :  { %87 = vxpose.xlu1.b32.cont [10/16] (narrow) %v71_v39, 8  ;;  %v426_v39 = vstv %s492_s5 }
  0x70   :  { %88 = vxpose.xlu1.b32.cont [11/16] (narrow) %v72_v40, 8 }
  0x74   :  { %89 = vxpose.xlu1.b32.cont [12/16] (narrow) %v73_v41, 8 }
  0x78   :  { %90 = vxpose.xlu1.b32.cont [13/16] (narrow) %v74_v42, 8 }
  0x7c   :  { %91 = vxpose.xlu1.b32.cont [14/16] (narrow) %v75_v43, 8 }
  0x80   :  { %92 = vxpose.xlu1.b32.cont [15/16] (narrow) %v76_v44, 8 }
  0x84   :  { %93 = vxpose.xlu1.b32.end [16/16] (narrow) %v77_v45, 8 }
  0x8e   :  { %v126_v47 = vpop.permute.xlu1 %125  ;;  %v136_v48 = vpop.permute.xlu0 %135 }
  0x92   :  { %v121_v51 = vpop.permute.xlu1 %120  ;;  %v131_v57 = vpop.permute.xlu0 %130 }
  0x96   :  { %v312_v12 = vpop.permute.xlu1 %311  ;;  %v307_v15 = vpop.permute.xlu0 %306 }
  0x9a   :  { %v409_v26 = vpop.permute.xlu0 %408  ;;  %v414_v27 = vpop.permute.xlu1 %413 }
  0x9e   :  { %v436_v33 = vpop.permute.xlu0 %435 }
  0xc4   :  { %v94_v34 = vpop.trf.xlu1 }
  0xc5   :  { %v438_v37 = vmul.f32 %v436_v33, %v94_v34 }
  0xc7   :  { %v440_v41 = vsel %vm439_vm2, %v438_v37, 0.0 }
  0xc8   :  { %v441_v43 = vrot.slane %v440_v41, 4 }
  0xca   :  { %v442_v45 = vadd.f32 %v441_v43, %v440_v41 }
  0xcc   :  { %v443_v46 = vrot.slane %v442_v45, 2 }
 0x110   :  { %v554_v49 = vpop.f32.mrf.mxu0 }
 0x111   :  { %v271_v50 = vadd.f32 %v554_v49, %v126_v47  ;;  %v444_v47 = vadd.f32 %v443_v46, %v442_v45 }
 0x112   :  { %v265_v52 = vpop.f32.mrf.mxu0 }
 0x113   :  { %v266_v53 = vadd.f32 %v265_v52, %v121_v51  ;;  %v285_v54 = vmul.f32 0.5, %v271_v50  ;;  %v445_v50 = vrot.slane %v444_v47, 1  ;;  %v448_v51 = vstv %s447_s8 }
 0x114   :  { %v557_v55 = vpop.f32.mrf.mxu0 }
 0x115   :  { %v281_v56 = vadd.f32 %v557_v55, %v136_v48  ;;  %v284_v58 = vmul.f32 0.5, %v266_v53  ;;  %574 = vtanh.f32 %v285_v54  ;;  %v446_v53 = vadd.f32 %v445_v50, %v444_v47 }
 0x116   :  { %v275_v59 = vpop.f32.mrf.mxu0  ;;  %v452_v55 = vstv %s493_s26 }
 0x117   :  { %v287_v60 = vmul.f32 0.5, %v281_v56  ;;  %v276_v61 = vadd.f32 %v275_v59, %v131_v57 }
 0x119   :  { %576 = vtanh.f32 %v287_v60  ;;  %v286_v62 = vmul.f32 0.5, %v276_v61 }
 0x11a   :  { %578 = vtanh.f32 %v284_v58 }
 0x11b   :  { %580 = vtanh.f32 %v286_v62 }
 0x122   :  { %v575_v63 = vpop.eup %574 }
 0x123   :  { %v293_v6 = vmul.f32 0.5, %v575_v63 }
 0x125   :  { %v297_v9 = vadd.f32 0.5, %v293_v6 }
 0x126   :  { %v577_v0 = vpop.eup %576 }
 0x127   :  { %v579_v1 = vpop.eup %578  ;;  %v295_v2 = vmul.f32 0.5, %v577_v0 }
 0x128   :  { %v581_v3 = vpop.eup %580  ;;  %v292_v8 = vmul.f32 0.5, %v579_v1 }
 0x129   :  { %v299_v4 = vadd.f32 0.5, %v295_v2  ;;  %v294_v5 = vmul.f32 0.5, %v581_v3 }
 0x12a   :  { %v296_v10 = vadd.f32 0.5, %v292_v8 }
 0x12b   :  { %558 = vmatprep.subr.mxu1 %v299_v4  ;;  %v298_v7 = vadd.f32 0.5, %v294_v5 }
 0x12c   :  { %559 = vmatpush3.msra.mxu1 %v299_v4 }
 0x12d   :  { %560 = vmatprep.subr.mxu1 %v298_v7 }
 0x12e   :  { %561 = vmatpush3.msra.mxu1 %v298_v7 }
 0x12f   :  { %562 = vmatprep.subr.mxu1 %v297_v9 }
 0x130   :  { %563 = vmatpush3.msra.mxu1 %v297_v9 }
 0x131   :  { %564 = vmatprep.subr.mxu1 %v296_v10 }
 0x132   :  { %565 = vmatpush3.msra.mxu1 %v296_v10 }
 0x133   :  { %567 = vmatmul.mubr.msk.f32.vlgmr.msra.gmra.mxu1 %vm314_vm1, %v301_v11 }
 0x1f3   :  { %v568_v13 = vpop.f32.mrf.mxu1 }
 0x1f4   :  { %v393_v14 = vadd.f32 %v568_v13, %v312_v12 }
 0x1f5   :  { %v387_v16 = vpop.f32.mrf.mxu1 }
 0x1f6   :  { %v397_v17 = vmul.f32 0.5, %v393_v14  ;;  %v388_v18 = vadd.f32 %v387_v16, %v307_v15 }
 0x1f8   :  { %582 = vtanh.f32 %v397_v17  ;;  %v396_v19 = vmul.f32 0.5, %v388_v18 }
 0x1fa   :  { %584 = vtanh.f32 %v396_v19 }
 0x205   :  { %v583_v20 = vpop.eup %582 }
 0x206   :  { %v401_v21 = vmul.f32 0.5, %v583_v20 }
 0x207   :  { %v585_v22 = vpop.eup %584 }
 0x208   :  { %v403_v23 = vadd.f32 0.5, %v401_v21  ;;  %v400_v24 = vmul.f32 0.5, %v585_v22 }
 0x20a   :  { %v402_v25 = vadd.f32 0.5, %v400_v24  ;;  %v417_v28 = vmul.f32 %v414_v27, %v403_v23 }
 0x20c   :  { %v416_v29 = vmul.f32 %v409_v26, %v402_v25 }
 0x20e   :  { %v418_v30 = vadd.f32 %v417_v28, %v416_v29 }
 0x210   :  { %v419_v31 = vrot.slane %v418_v30, 4 }
 0x212   :  { %v420_v32 = vadd.f32 %v419_v31, %v418_v30 }
 0x214   :  { %v421_v35 = vrot.slane %v420_v32, 2 }
 0x216   :  { %v422_v36 = vadd.f32 %v421_v35, %v420_v32 }
 0x218   :  { %v423_v38 = vrot.slane %v422_v36, 1 }
 0x21a   :  { %v424_v40 = vadd.f32 %v423_v38, %v422_v36 }
 0x21c   :  { %v427_v42 = vadd.f32 %v426_v39, %v424_v40 }
 0x21e   :  { %v428_v44 = vmul.f32 0.5, %v427_v42 }
 0x220   :  { %586 = vtanh.f32 %v428_v44 }
 0x22d   :  { %v587_v48 = vpop.eup %586 }
 0x22e   :  { %v430_v49 = vmul.f32 0.5, %v587_v48 }
 0x230   :  { %v431_v52 = vadd.f32 0.5, %v430_v49 }
 0x232   :  { %v449_v54 = vmul.f32 %v448_v51, %v431_v52 }
 0x234   :  { %v450_v56 = vadd.f32 %v449_v54, %v446_v53 }
 0x236   :  { %v453_v57 = vadd.f32 %v452_v55, %v450_v56 }
 0x238   :  { %454 = vst [vmem:[#allocation5] sm:$0x1] %v453_v57 }
 0x239   :  { %611 = shalt.err (!%p608_p9)
}
 0x23a   :  { %464 = dma.vmem_to_hbm [thread:$0]  %s462_s28, 16, %s871_s9, [#allocation3]  }
 0x23b   :  { %622 = dma.done.wait [#allocation3], 16  }
 0x23c   :  { %623 = vsyncadd [#allocation3], 4294967280 }
 0x23d   :  { %468 = vsyncpa [#allocation3], 1 }
 0x23e   :  { %469 = vsyncpa [#allocation4], 1 }

// kernel: tpu_custom_call.1
= control target key start
LH: loop header
LB: loop body
LE: loop exit
PB: predicated region body
PF: predicated region fallthrough
CT: control target
= control target key end

     0   :  { %14 = vsyncpa [#allocation4], 0  ;;  %s576_s0 = inlined_call_operand.vmem [shape: f32[16,8], index: 0, kind: input, shape index: {}]   ;;  %s577_s1 = inlined_call_operand.vmem [shape: f32[4,8], index: 1, kind: input, shape index: {}]   ;;  %s578_s2 = inlined_call_operand.vmem [shape: f32[1,3], index: 2, kind: input, shape index: {}]   ;;  %s579_s3 = inlined_call_operand.vmem [shape: f32[32,16], index: 3, kind: input, shape index: {}]   ;;  %s580_s4 = inlined_call_operand.vmem [shape: f32[32,1], index: 4, kind: input, shape index: {}]   ;;  %s581_s5 = inlined_call_operand.vmem [shape: f32[16,32], index: 5, kind: input, shape index: {}]   ;;  %s582_s6 = inlined_call_operand.vmem [shape: f32[16,1], index: 6, kind: input, shape index: {}]   ;;  %s583_s7 = inlined_call_operand.vmem [shape: f32[16,1], index: 7, kind: input, shape index: {}]   ;;  %s584_s8 = inlined_call_operand.vmem [shape: f32[4,1], index: 8, kind: input, shape index: {}]   ;;  %s585_s9 = inlined_call_operand.hbm [shape: f32[1,8], index: 9, kind: output, shape index: {}]  }
   0x1   :  { %15 = vsyncpa [#allocation3], 0  ;;  %s26_s11 = sshll.u32 %s578_s2, 4  ;;  %s27_s11 = int_to_ptr.vmem [resolvable:$true] %s26_s11 }
   0x2   :  { %s421_s12 = scalar_lea.vmem %s27_s11, 16  ;;  %p426_p1 = scmp.lt.s32.totalorder %s27_s11, %s27_s11 }
   0x3   :  { %p422_p0 = scmp.ne.s32.totalorder %s27_s11, %s421_s12  ;;  %p427_p2 = scmp.lt.s32.totalorder %s421_s12, %s421_s12 }
   0x5   :  { %p428_p3 = por %p427_p2, %p426_p1 }
   0x7   :  { %p429_p4 = pnand %p428_p3, %p422_p0 }
   0x9   :  { %432 = shalt.err (!%p429_p4)
}
   0xa   :  { %s457_s13 = smov [#allocation2]  }
   0xb   :  { %29 = dma.vmem_to_smem %s27_s11, 16, %s457_s13, [#allocation4]  }
   0xc   :  { %453 = dma.done.wait [#allocation4], 16  }
   0xd   :  { %454 = vsyncadd [#allocation4], 4294967280 }
   0xe   :  { %45 = sfence }
   0xf   :  { %v47_v0 = vld [vmem:[%s576_s0 + $0x8] sm:$0xff]  ;;  %v46_v1 = vld [vmem:[%s576_s0] sm:$0xff]  ;;  %vm77_vm0 = vcmask 130048   ;;  %v458_v4 = vmov 0   ;;  %v56_v5 = vld [vmem:[%s580_s4 + $0x18] sm:$0xff]  ;;  %vm205_vm1 = vcmask 261120  }
  0x10   :  { %v49_v2 = vld [vmem:[%s579_s3] sm:$0xff]  ;;  %381 = vmatprep.subr.mxu0 %v47_v0  ;;  %v50_v3 = vld [vmem:[%s579_s3 + $0x8] sm:$0xff]  ;;  %405 = vset.pattern.permute.xlu0 %v458_v4  ;;  %v51_v6 = vld [vmem:[%s579_s3 + $0x10] sm:$0xff]  ;;  %vm330_vm2 = vcmask 1043456   ;;  %s338_s21 = sld [smem:[#allocation2]] }
  0x11   :  { %385 = vmatprep.mubr.msk.f32.mxu0 %vm77_vm0, %v49_v2  ;;  %382 = vmatpush3.msra.mxu0 %v47_v0  ;;  %v54_v7 = vld [vmem:[%s580_s4 + $0x8] sm:$0xff]  ;;  %v55_v8 = vld [vmem:[%s580_s4 + $0x10] sm:$0xff]  ;;  %v52_v9 = vld [vmem:[%s579_s3 + $0x18] sm:$0xff]  ;;  %s368_s22 = sld [smem:[#allocation2 + $0x1]] }
  0x12   :  { %383 = vmatprep.subr.mxu0 %v46_v1  ;;  %74 = vperm.xlu0 %405, %v56_v5   ;;  %v53_v10 = vld [vmem:[%s580_s4] sm:$0xff]  ;;  %v194_v12 = vld [vmem:[%s582_s6 + $0x8] sm:$0xff] }
  0x13   :  { %384 = vmatpush3.msra.mxu0 %v46_v1  ;;  %406 = vset.pattern.permute.xlu1 %v458_v4  ;;  %v193_v11 = vld [vmem:[%s582_s6] sm:$0xff]  ;;  %v296_v14 = vld [vmem:[%s583_s7 + $0x8] sm:$0xff] }
  0x14   :  { %386 = vmatmul.mubr.msk.f32.vlgmr.msra.gmra.mxu0 %vm77_vm0, %v50_v3  ;;  %64 = vperm.xlu1 %406, %v54_v7   ;;  %v295_v13 = vld [vmem:[%s583_s7] sm:$0xff]  ;;  %v192_v45 = vld [vmem:[%s581_s5 + $0x8] sm:$0xff] }
  0x15   :  { %388 = vmatprep.mubr.msk.f32.mxu0 %vm77_vm0, %v51_v6  ;;  %v323_v15 = vld [vmem:[%s584_s8] sm:$0xf] }
  0x16   :  { %69 = vperm.xlu0 %405, %v55_v8   ;;  %v191_v16 = vld [vmem:[%s581_s5] sm:$0xff]  ;;  %s367_s5 = sld [smem:[#allocation2 + $0x2]] }
  0x17   :  { %399 = vmatprep.mubr.msk.f32.mxu1 %vm205_vm1, %v191_v16  ;;  %v48_v4 = vld [vmem:[%s577_s1] sm:$0xf]  ;;  %s459_s1 = smov [#allocation5]  }
  0x18   :  { %389 = vmatmul.mubr.msk.f32.gmra.mxu0 %vm77_vm0, %v52_v9  ;;  %59 = vperm.xlu1 %406, %v53_v10   ;;  %s352_s0 = sshll.u32 %s459_s1, 4  ;;  %s353_s0 = int_to_ptr.vmem [resolvable:$true] %s352_s0 }
  0x19   :  { %s433_s23 = scalar_lea.vmem %s353_s0, 16  ;;  %s437_s24 = scalar_lea.vmem %s353_s0, 32 }
  0x1a   :  { %197 = vperm.xlu0 %405, %v193_v11   ;;  %p434_p5 = scmp.ne.s32.totalorder %s353_s0, %s433_s23  ;;  %p438_p6 = scmp.lt.s32.totalorder %s353_s0, %s353_s0 }
  0x1b   :  { %p439_p7 = scmp.lt.s32.totalorder %s437_s24, %s433_s23 }
  0x1c   :  { %202 = vperm.xlu1 %406, %v194_v12   ;;  %v317_v9 = vstv %s367_s5 }
  0x1d   :  { %p440_p8 = por %p439_p7, %p438_p6 }
  0x1e   :  { %299 = vperm.xlu0 %405, %v295_v13  }
  0x1f   :  { %p441_p9 = pnand %p440_p8, %p434_p5 }
  0x20   :  { %304 = vperm.xlu1 %406, %v296_v14  }
  0x22   :  { %326 = vperm.xlu0 %405, %v323_v15  }
  0x8d   :  { %v75_v18 = vpop.permute.xlu0 %74 }
  0x8f   :  { %v65_v17 = vpop.permute.xlu1 %64 }
  0x91   :  { %v70_v27 = vpop.permute.xlu0 %69 }
  0x93   :  { %v60_v21 = vpop.permute.xlu1 %59 }
  0x95   :  { %v198_v49 = vpop.permute.xlu0 %197 }
  0x97   :  { %v203_v46 = vpop.permute.xlu1 %202 }
  0x99   :  { %v300_v60 = vpop.permute.xlu0 %299 }
  0x9b   :  { %v305_v61 = vpop.permute.xlu1 %304 }
  0x9d   :  { %v327_v3 = vpop.permute.xlu0 %326 }
  0x9e   :  { %v329_v7 = vmul.f32 %v327_v3, %v48_v4 }
  0xa0   :  { %v331_v11 = vsel %vm330_vm2, %v329_v7, 0.0 }
  0xa1   :  { %v332_v13 = vrot.slane %v331_v11, 4 }
  0xa3   :  { %v333_v15 = vadd.f32 %v332_v13, %v331_v11 }
  0xa5   :  { %v334_v16 = vrot.slane %v333_v15, 2 }
  0xd4   :  { %v387_v19 = vpop.f32.mrf.mxu0 }
  0xd5   :  { %v162_v20 = vadd.f32 %v387_v19, %v65_v17  ;;  %v335_v17 = vadd.f32 %v334_v16, %v333_v15 }
  0xd6   :  { %v156_v22 = vpop.f32.mrf.mxu0 }
  0xd7   :  { %v157_v23 = vadd.f32 %v156_v22, %v60_v21  ;;  %v176_v24 = vmul.f32 0.5, %v162_v20  ;;  %v336_v20 = vrot.slane %v335_v17, 1  ;;  %v339_v21 = vstv %s338_s21 }
  0xd8   :  { %v390_v25 = vpop.f32.mrf.mxu0 }
  0xd9   :  { %v172_v26 = vadd.f32 %v390_v25, %v75_v18  ;;  %v175_v28 = vmul.f32 0.5, %v157_v23  ;;  %407 = vtanh.f32 %v176_v24  ;;  %v337_v23 = vadd.f32 %v336_v20, %v335_v17 }
  0xda   :  { %v166_v29 = vpop.f32.mrf.mxu0  ;;  %v343_v25 = vstv %s368_s22 }
  0xdb   :  { %v178_v30 = vmul.f32 0.5, %v172_v26  ;;  %v167_v31 = vadd.f32 %v166_v29, %v70_v27 }
  0xdd   :  { %409 = vtanh.f32 %v178_v30  ;;  %v177_v32 = vmul.f32 0.5, %v167_v31 }
  0xde   :  { %411 = vtanh.f32 %v175_v28 }
  0xdf   :  { %413 = vtanh.f32 %v177_v32 }
  0xe6   :  { %v408_v33 = vpop.eup %407 }
  0xe7   :  { %v184_v40 = vmul.f32 0.5, %v408_v33 }
  0xe9   :  { %v188_v43 = vadd.f32 0.5, %v184_v40 }
  0xea   :  { %v410_v34 = vpop.eup %409 }
  0xeb   :  { %v412_v35 = vpop.eup %411  ;;  %v186_v36 = vmul.f32 0.5, %v410_v34 }
  0xec   :  { %v414_v37 = vpop.eup %413  ;;  %v183_v42 = vmul.f32 0.5, %v412_v35 }
  0xed   :  { %v190_v38 = vadd.f32 0.5, %v186_v36  ;;  %v185_v39 = vmul.f32 0.5, %v414_v37 }
  0xee   :  { %v187_v44 = vadd.f32 0.5, %v183_v42 }
  0xef   :  { %391 = vmatprep.subr.mxu1 %v190_v38  ;;  %v189_v41 = vadd.f32 0.5, %v185_v39 }
  0xf0   :  { %392 = vmatpush3.msra.mxu1 %v190_v38 }
  0xf1   :  { %393 = vmatprep.subr.mxu1 %v189_v41 }
  0xf2   :  { %394 = vmatpush3.msra.mxu1 %v189_v41 }
  0xf3   :  { %395 = vmatprep.subr.mxu1 %v188_v43 }
  0xf4   :  { %396 = vmatpush3.msra.mxu1 %v188_v43 }
  0xf5   :  { %397 = vmatprep.subr.mxu1 %v187_v44 }
  0xf6   :  { %398 = vmatpush3.msra.mxu1 %v187_v44 }
  0xf7   :  { %400 = vmatmul.mubr.msk.f32.vlgmr.msra.gmra.mxu1 %vm205_vm1, %v192_v45 }
 0x1b7   :  { %v401_v47 = vpop.f32.mrf.mxu1 }
 0x1b8   :  { %v284_v48 = vadd.f32 %v401_v47, %v203_v46 }
 0x1b9   :  { %v278_v50 = vpop.f32.mrf.mxu1 }
 0x1ba   :  { %v288_v51 = vmul.f32 0.5, %v284_v48  ;;  %v279_v52 = vadd.f32 %v278_v50, %v198_v49 }
 0x1bc   :  { %415 = vtanh.f32 %v288_v51  ;;  %v287_v53 = vmul.f32 0.5, %v279_v52 }
 0x1be   :  { %417 = vtanh.f32 %v287_v53 }
 0x1c9   :  { %v416_v54 = vpop.eup %415 }
 0x1ca   :  { %v292_v55 = vmul.f32 0.5, %v416_v54 }
 0x1cb   :  { %v418_v56 = vpop.eup %417 }
 0x1cc   :  { %v294_v57 = vadd.f32 0.5, %v292_v55  ;;  %v291_v58 = vmul.f32 0.5, %v418_v56 }
 0x1ce   :  { %v293_v59 = vadd.f32 0.5, %v291_v58  ;;  %v308_v62 = vmul.f32 %v305_v61, %v294_v57 }
 0x1d0   :  { %v307_v63 = vmul.f32 %v300_v60, %v293_v59 }
 0x1d2   :  { %v309_v0 = vadd.f32 %v308_v62, %v307_v63 }
 0x1d4   :  { %v310_v1 = vrot.slane %v309_v0, 4 }
 0x1d6   :  { %v311_v2 = vadd.f32 %v310_v1, %v309_v0 }
 0x1d8   :  { %v312_v5 = vrot.slane %v311_v2, 2 }
 0x1da   :  { %v313_v6 = vadd.f32 %v312_v5, %v311_v2 }
 0x1dc   :  { %v314_v8 = vrot.slane %v313_v6, 1 }
 0x1de   :  { %v315_v10 = vadd.f32 %v314_v8, %v313_v6 }
 0x1e0   :  { %v318_v12 = vadd.f32 %v317_v9, %v315_v10 }
 0x1e2   :  { %v319_v14 = vmul.f32 0.5, %v318_v12 }
 0x1e4   :  { %419 = vtanh.f32 %v319_v14 }
 0x1f1   :  { %v420_v18 = vpop.eup %419 }
 0x1f2   :  { %v321_v19 = vmul.f32 0.5, %v420_v18 }
 0x1f4   :  { %v322_v22 = vadd.f32 0.5, %v321_v19 }
 0x1f6   :  { %v340_v24 = vmul.f32 %v339_v21, %v322_v22 }
 0x1f8   :  { %v341_v26 = vadd.f32 %v340_v24, %v337_v23 }
 0x1fa   :  { %v344_v27 = vadd.f32 %v343_v25, %v341_v26 }
 0x1fc   :  { %345 = vst [vmem:[#allocation5] sm:$0x1] %v344_v27 }
 0x1fd   :  { %444 = shalt.err (!%p441_p9)
}
 0x1fe   :  { %355 = dma.vmem_to_hbm [thread:$0]  %s353_s0, 16, %s585_s9, [#allocation3]  }
 0x1ff   :  { %455 = dma.done.wait [#allocation3], 16  }
 0x200   :  { %456 = vsyncadd [#allocation3], 4294967280 }
 0x201   :  { %359 = vsyncpa [#allocation3], 1 }
 0x202   :  { %360 = vsyncpa [#allocation4], 1 }

</bundles_post_ra>
